<compile_context>
chip_gen: v7x
topology: tpu7x:2x2x1
jax: 0.10.0
libtpu: 0.0.40
codegen_flags: <defaults>
</compile_context>

<pallas_src>
import functools

import jax
import jax.numpy as jnp
import numpy as np
from jax.experimental import pallas as pl
from jax.experimental.pallas import tpu as pltpu


def _dino_loss_kernel(t_ref, s_ref, c_ref, loss_part_ref, center_part_ref,
                      q_ref, *, inv_teacher_temp, inv_student_temp):
    v = pl.program_id(1)   # student crop index (0 .. ncrops-1)

    # ---- per-row-tile teacher work: done ONCE per row tile (at v == 0) -----
    @pl.when(v == 0)
    def _teacher():
        t = t_ref[...].astype(jnp.float32)            # (2, TB, D)
        c = c_ref[...].astype(jnp.float32)            # (1, D)

        # This row tile's teacher sum (center EMA is finished in the wrapper).
        center_part_ref[...] = jnp.sum(jnp.sum(t, axis=0), axis=0,
                                       keepdims=True)               # (1, D)

        # softmax((t - center) / temp): exp, then ONE exact reciprocal per row
        # and a broadcast multiply (instead of a per-element divide) so the
        # EUP slot stays free for the exp passes.
        z = (t - c[None]) * inv_teacher_temp
        z = z - jnp.max(z, axis=-1, keepdims=True)
        ze = jnp.exp(z)
        inv_den = 1.0 / jnp.sum(ze, axis=-1, keepdims=True)          # (2,TB,1)
        q = ze * inv_den                                             # (2,TB,D)

        # Cache q0, q1 and q0+q1 so each crop needs a single dynamic-slot load.
        q_ref[0] = q[0]
        q_ref[1] = q[1]
        q_ref[2] = q[0] + q[1]

        # Zero this row tile's resident loss-partial block.
        loss_part_ref[...] = jnp.zeros_like(loss_part_ref)

    # ---- student log-softmax: computed exactly once per (crop, row tile) ---
    s = s_ref[0].astype(jnp.float32) * inv_student_temp             # (TB, D)
    s = s - jnp.max(s, axis=-1, keepdims=True)
    lse = jnp.log(jnp.sum(jnp.exp(s), axis=-1, keepdims=True))
    neg_logp = lse - s                                               # -log_softmax

    # Teacher distribution for this crop: v==0 -> q1, v==1 -> q0, v>=2 -> q0+q1.
    idx = jnp.where(v < 2, 1 - v, 2)
    q_eff = q_ref[idx]                                               # (TB, D)

    # Lane-dense partial accumulation; the final D->1 lane reduce and the
    # 1/(B*n_loss_terms) scaling happen on tiny partials in the JAX wrapper.
    loss_part_ref[...] += jnp.sum(q_eff * neg_logp, axis=0, keepdims=True)


def _pick_row_block(b, d, in_itemsize, quantum, budget_bytes):
    """Largest row tile (dividing b, respecting the dtype quantum) whose live
    VMEM footprint -- double-buffered input blocks, q scratch planes and the
    in-body f32 elementwise temporaries -- fits the budget."""
    bytes_per_row = d * (
        2 * 3 * in_itemsize   # double-buffered student (1 chunk) + teacher (2)
        + 3 * 4               # q scratch: q0, q1, q0+q1 (f32)
        + 6 * 4)              # ~6 f32 elementwise temporaries (z/ze/s/exp/...)
    candidates = [b] + [rb for rb in range(quantum, b, quantum) if b % rb == 0]
    candidates.sort(reverse=True)
    for rb in candidates:
        if rb * bytes_per_row <= budget_bytes:
            return rb
    return candidates[-1]   # best effort: smallest legal tile


def dino_loss(student_output, teacher_output, center, epoch, *,
              ncrops, teacher_temp_schedule, student_temp=0.1,
              center_momentum=0.9, row_block=None, vmem_limit_bytes=None):
    """Returns (total_loss scalar, updated center (1, D))."""
    n_student, d = student_output.shape
    n_teacher, d_t = teacher_output.shape
    assert d == d_t
    assert ncrops >= 2
    assert n_student % ncrops == 0 and n_teacher % 2 == 0
    b = n_student // ncrops
    assert b == n_teacher // 2, "student / teacher per-crop batch must match"

    # bf16 inputs need a 16-row packing quantum; f32 needs 8 (unless the block
    # covers the full chunk).
    in_itemsize = min(student_output.dtype.itemsize,
                      teacher_output.dtype.itemsize)
    quantum = 16 if in_itemsize == 2 else 8

    if vmem_limit_bytes is None:
        # Above v5e/v6e's scoped defaults, below v7x's 64 MiB physical VMEM.
        vmem_limit_bytes = 48 * 1024 * 1024
    if row_block is None:
        row_block = _pick_row_block(b, d, in_itemsize, quantum,
                                    budget_bytes=int(0.85 * vmem_limit_bytes))
    assert b % row_block == 0
    assert row_block == b or row_block % quantum == 0
    n_row_tiles = b // row_block

    n_loss_terms = sum(1 for iq in range(2) for v in range(ncrops) if v != iq)

    # Teacher temperature is a static Python value -> folded at trace time.
    teacher_temp = float(teacher_temp_schedule[epoch])

    # Crops / teacher chunks become a leading axis so row tiles of every chunk
    # can be addressed with plain block indices.
    student_r = student_output.reshape(ncrops, b, d)
    teacher_r = teacher_output.reshape(2, b, d)

    kernel = functools.partial(
        _dino_loss_kernel,
        inv_teacher_temp=1.0 / teacher_temp,
        inv_student_temp=1.0 / float(student_temp),
    )

    loss_parts, center_parts = pl.pallas_call(
        kernel,
        out_shape=(
            jax.ShapeDtypeStruct((n_row_tiles, d), jnp.float32),  # loss partials
            jax.ShapeDtypeStruct((n_row_tiles, d), jnp.float32),  # center partials
        ),
        grid_spec=pltpu.PrefetchScalarGridSpec(
            num_scalar_prefetch=0,
            # Row tiles outer (parallel), crops inner: the cached teacher
            # softmax for a row tile is reused by every crop before moving on.
            grid=(n_row_tiles, ncrops),
            in_specs=[
                pl.BlockSpec((2, row_block, d), lambda r, v: (0, r, 0)),  # teacher
                pl.BlockSpec((1, row_block, d), lambda r, v: (v, r, 0)),  # student
                pl.BlockSpec((1, d), lambda r, v: (0, 0)),                # center
            ],
            out_specs=(
                pl.BlockSpec((1, d), lambda r, v: (r, 0)),   # per-tile loss partial
                pl.BlockSpec((1, d), lambda r, v: (r, 0)),   # per-tile center partial
            ),
            scratch_shapes=[
                pltpu.VMEM((3, row_block, d), jnp.float32),  # q0, q1, q0+q1
            ],
        ),
        compiler_params=pltpu.CompilerParams(
            # No state is carried across row tiles -> the row axis can be
            # sharded across TensorCores (v7x). The crop axis revisits the
            # resident per-tile output blocks -> "arbitrary".
            dimension_semantics=("parallel", "arbitrary"),
            vmem_limit_bytes=vmem_limit_bytes,
        ),
    )(teacher_r, student_r, center)

    # Tiny finishing work on (n_row_tiles, D) partials.
    scale = 1.0 / (float(b) * float(n_loss_terms))
    total_loss = jnp.sum(loss_parts) * scale
    batch_center = jnp.sum(center_parts, axis=0, keepdims=True) / float(n_teacher)
    new_center = (center.astype(jnp.float32) * center_momentum
                  + batch_center * (1.0 - center_momentum))
    return total_loss, new_center


# ----------------------------- reference (plain JAX) ------------------------
def dino_loss_ref(student_output, teacher_output, center, temp, *,
                  ncrops, student_temp, center_momentum):
    s = student_output / student_temp
    s_chunks = jnp.split(s, ncrops, axis=0)
    t = jax.nn.softmax((teacher_output - center) / temp, axis=-1)
    t_chunks = jnp.split(t, 2, axis=0)
    total, n = 0.0, 0
    for iq, q in enumerate(t_chunks):
        for v in range(ncrops):
            if v == iq:
                continue
            loss = jnp.sum(-q * jax.nn.log_softmax(s_chunks[v], axis=-1),
                           axis=-1)
            total = total + loss.mean()
            n += 1
    total = total / n
    new_center = (center * center_momentum +
                  (jnp.sum(teacher_output, axis=0, keepdims=True) /
                   teacher_output.shape[0]) * (1 - center_momentum))
    return total, new_center


if __name__ == "__main__":
    # Module hyper-parameters (synthetic, deterministic).
    out_dim = 128
    ncrops = 4
    warmup_teacher_temp = 0.04
    teacher_temp = 0.07
    warmup_teacher_temp_epochs = 5
    nepochs = 20
    student_temp = 0.1
    center_momentum = 0.9
    epoch = 3

    teacher_temp_schedule = np.concatenate((
        np.linspace(warmup_teacher_temp, teacher_temp,
                    warmup_teacher_temp_epochs),
        np.ones(nepochs - warmup_teacher_temp_epochs) * teacher_temp,
    ))

    batch_per_crop = 16
    key = jax.random.PRNGKey(0)
    k1, k2 = jax.random.split(key)
    student_output = jax.random.normal(
        k1, (ncrops * batch_per_crop, out_dim), dtype=jnp.float32)
    teacher_output = jax.random.normal(
        k2, (2 * batch_per_crop, out_dim), dtype=jnp.float32)
    center = jnp.zeros((1, out_dim), dtype=jnp.float32)  # register_buffer init

    ref_loss, ref_center = dino_loss_ref(
        student_output, teacher_output, center,
        float(teacher_temp_schedule[epoch]),
        ncrops=ncrops, student_temp=student_temp,
        center_momentum=center_momentum)

    # 1) Auto (VMEM-aware) row_block: single row tile for this small shape.
    loss_a, center_a = dino_loss(
        student_output, teacher_output, center, epoch,
        ncrops=ncrops, teacher_temp_schedule=teacher_temp_schedule,
        student_temp=student_temp, center_momentum=center_momentum)
    jax.block_until_ready((loss_a, center_a))

    # 2) Explicit row_block=8: exercises the multi-row-tile ("parallel") path.
    loss_b, center_b = dino_loss(
        student_output, teacher_output, center, epoch,
        ncrops=ncrops, teacher_temp_schedule=teacher_temp_schedule,
        student_temp=student_temp, center_momentum=center_momentum,
        row_block=8)
    jax.block_until_ready((loss_b, center_b))

    for loss, new_center in ((loss_a, center_a), (loss_b, center_b)):
        assert np.allclose(np.asarray(loss), np.asarray(ref_loss),
                           rtol=1e-5, atol=1e-5), (loss, ref_loss)
        assert np.allclose(np.asarray(new_center), np.asarray(ref_center),
                           rtol=1e-5, atol=1e-5)

    print("KERNEL_OK")
</pallas_src>

<mosaic_0001>
module attributes {stable_mosaic.version = 11 : i64} {
  func.func @_dino_loss_kernel(%arg0: i32, %arg1: i32, %arg2: memref<2x16x128xf32, #tpu.memory_space<vmem>>, %arg3: memref<1x16x128xf32, #tpu.memory_space<vmem>>, %arg4: memref<1x128xf32, #tpu.memory_space<vmem>>, %arg5: memref<1x128xf32, #tpu.memory_space<vmem>>, %arg6: memref<1x128xf32, #tpu.memory_space<vmem>>, %arg7: memref<3x16x128xf32, #tpu.memory_space<vmem>>) attributes {dimension_semantics = [#tpu.dimension_semantics<parallel>, #tpu.dimension_semantics<arbitrary>], iteration_bounds = array<i64: 1, 4>, scalar_prefetch = 0 : i64, scratch_operands = 1 : i64, tpu.core_type = #tpu.core_type<tc>, window_params = [{transform_indices = @transform_0, window_bounds = array<i64: 2, 16, 128>}, {transform_indices = @transform_1, window_bounds = array<i64: 1, 16, 128>}, {pipeline_mode = #tpu.pipeline_mode<synchronous>, transform_indices = @transform_2, window_bounds = array<i64: 1, 128>}, {transform_indices = @transform_3, window_bounds = array<i64: 1, 128>}, {transform_indices = @transform_4, window_bounds = array<i64: 1, 128>}]} {
    %c0_i32 = arith.constant 0 : i32
    %0 = arith.cmpi eq, %arg1, %c0_i32 : i32
    %1 = arith.extui %0 : i1 to i32
    %c0_i32_0 = arith.constant 0 : i32
    %2 = arith.cmpi ne, %1, %c0_i32_0 : i32
    scf.if %2 {
      %c0_13 = arith.constant 0 : index
      %c0_14 = arith.constant 0 : index
      %c0_15 = arith.constant 0 : index
      %29 = vector.load %arg2[%c0_13, %c0_14, %c0_15] : memref<2x16x128xf32, #tpu.memory_space<vmem>>, vector<2x16x128xf32>
      %c0_16 = arith.constant 0 : index
      %c0_17 = arith.constant 0 : index
      %30 = vector.load %arg4[%c0_16, %c0_17] : memref<1x128xf32, #tpu.memory_space<vmem>>, vector<1x128xf32>
      %cst_18 = arith.constant dense<0.000000e+00> : vector<16x128xf32>
      %31 = vector.multi_reduction <add>, %29, %cst_18 [0] : vector<2x16x128xf32> to vector<16x128xf32>
      %cst_19 = arith.constant dense<0.000000e+00> : vector<128xf32>
      %32 = vector.multi_reduction <add>, %31, %cst_19 [0] : vector<16x128xf32> to vector<128xf32>
      %33 = vector.shape_cast %32 : vector<128xf32> to vector<1x128xf32>
      %c0_20 = arith.constant 0 : index
      %c0_21 = arith.constant 0 : index
      %34 = vector.load %arg6[%c0_20, %c0_21] : memref<1x128xf32, #tpu.memory_space<vmem>>, vector<1x128xf32>
      tpu.vector_store %arg6[%c0_20, %c0_21], %33 {strides = array<i32>} : memref<1x128xf32, #tpu.memory_space<vmem>>, vector<1x128xf32>,
      %35 = vector.shape_cast %30 : vector<1x128xf32> to vector<1x1x128xf32>
      %36 = vector.broadcast %35 : vector<1x1x128xf32> to vector<2x16x128xf32>
      %37 = arith.subf %29, %36 : vector<2x16x128xf32>
      %cst_22 = arith.constant 1.600000e+01 : f32
      %38 = vector.broadcast %cst_22 : f32 to vector<2x16x128xf32>
      %39 = arith.mulf %37, %38 : vector<2x16x128xf32>
      %cst_23 = arith.constant dense<0xFF800000> : vector<2x16xf32>
      %40 = vector.multi_reduction <maximumf>, %39, %cst_23 [2] : vector<2x16x128xf32> to vector<2x16xf32>
      %41 = vector.shape_cast %40 : vector<2x16xf32> to vector<2x16x1xf32>
      %42 = vector.broadcast %41 : vector<2x16x1xf32> to vector<2x16x128xf32>
      %43 = arith.subf %39, %42 : vector<2x16x128xf32>
      %44 = math.exp %43 : vector<2x16x128xf32>
      %cst_24 = arith.constant dense<0.000000e+00> : vector<2x16xf32>
      %45 = vector.multi_reduction <add>, %44, %cst_24 [2] : vector<2x16x128xf32> to vector<2x16xf32>
      %46 = vector.shape_cast %45 : vector<2x16xf32> to vector<2x16x1xf32>
      %cst_25 = arith.constant 1.000000e+00 : f32
      %47 = vector.broadcast %cst_25 : f32 to vector<2x16x1xf32>
      %48 = arith.divf %47, %46 : vector<2x16x1xf32>
      %49 = vector.broadcast %48 : vector<2x16x1xf32> to vector<2x16x128xf32>
      %50 = arith.mulf %44, %49 : vector<2x16x128xf32>
      %51 = vector.extract_strided_slice %50 {offsets = [0, 0, 0], sizes = [1, 16, 128], strides = [1, 1, 1]} : vector<2x16x128xf32> to vector<1x16x128xf32>
      %52 = vector.shape_cast %51 : vector<1x16x128xf32> to vector<16x128xf32>
      %c0_26 = arith.constant 0 : index
      %c0_27 = arith.constant 0 : index
      %c0_28 = arith.constant 0 : index
      %53 = vector.load %arg7[%c0_26, %c0_27, %c0_28] : memref<3x16x128xf32, #tpu.memory_space<vmem>>, vector<1x16x128xf32>
      %54 = vector.shape_cast %53 : vector<1x16x128xf32> to vector<16x128xf32>
      %55 = vector.shape_cast %52 : vector<16x128xf32> to vector<1x16x128xf32>
      tpu.vector_store %arg7[%c0_26, %c0_27, %c0_28], %55 {strides = array<i32>} : memref<3x16x128xf32, #tpu.memory_space<vmem>>, vector<1x16x128xf32>,
      %56 = vector.extract_strided_slice %50 {offsets = [1, 0, 0], sizes = [1, 16, 128], strides = [1, 1, 1]} : vector<2x16x128xf32> to vector<1x16x128xf32>
      %57 = vector.shape_cast %56 : vector<1x16x128xf32> to vector<16x128xf32>
      %c1 = arith.constant 1 : index
      %c0_29 = arith.constant 0 : index
      %c0_30 = arith.constant 0 : index
      %58 = vector.load %arg7[%c1, %c0_29, %c0_30] : memref<3x16x128xf32, #tpu.memory_space<vmem>>, vector<1x16x128xf32>
      %59 = vector.shape_cast %58 : vector<1x16x128xf32> to vector<16x128xf32>
      %60 = vector.shape_cast %57 : vector<16x128xf32> to vector<1x16x128xf32>
      tpu.vector_store %arg7[%c1, %c0_29, %c0_30], %60 {strides = array<i32>} : memref<3x16x128xf32, #tpu.memory_space<vmem>>, vector<1x16x128xf32>,
      %61 = vector.extract_strided_slice %50 {offsets = [0, 0, 0], sizes = [1, 16, 128], strides = [1, 1, 1]} : vector<2x16x128xf32> to vector<1x16x128xf32>
      %62 = vector.shape_cast %61 : vector<1x16x128xf32> to vector<16x128xf32>
      %63 = vector.extract_strided_slice %50 {offsets = [1, 0, 0], sizes = [1, 16, 128], strides = [1, 1, 1]} : vector<2x16x128xf32> to vector<1x16x128xf32>
      %64 = vector.shape_cast %63 : vector<1x16x128xf32> to vector<16x128xf32>
      %65 = arith.addf %62, %64 : vector<16x128xf32>
      %c2 = arith.constant 2 : index
      %c0_31 = arith.constant 0 : index
      %c0_32 = arith.constant 0 : index
      %66 = vector.load %arg7[%c2, %c0_31, %c0_32] : memref<3x16x128xf32, #tpu.memory_space<vmem>>, vector<1x16x128xf32>
      %67 = vector.shape_cast %66 : vector<1x16x128xf32> to vector<16x128xf32>
      %68 = vector.shape_cast %65 : vector<16x128xf32> to vector<1x16x128xf32>
      tpu.vector_store %arg7[%c2, %c0_31, %c0_32], %68 {strides = array<i32>} : memref<3x16x128xf32, #tpu.memory_space<vmem>>, vector<1x16x128xf32>,
      %cst_33 = arith.constant 0.000000e+00 : f32
      %69 = vector.broadcast %cst_33 : f32 to vector<1x128xf32>
      %c0_34 = arith.constant 0 : index
      %c0_35 = arith.constant 0 : index
      %70 = vector.load %arg5[%c0_34, %c0_35] : memref<1x128xf32, #tpu.memory_space<vmem>>, vector<1x128xf32>
      tpu.vector_store %arg5[%c0_34, %c0_35], %69 {strides = array<i32>} : memref<1x128xf32, #tpu.memory_space<vmem>>, vector<1x128xf32>,
    } else {
    }
    %c0 = arith.constant 0 : index
    %c0_1 = arith.constant 0 : index
    %c0_2 = arith.constant 0 : index
    %3 = vector.load %arg3[%c0, %c0_1, %c0_2] : memref<1x16x128xf32, #tpu.memory_space<vmem>>, vector<1x16x128xf32>
    %4 = vector.shape_cast %3 : vector<1x16x128xf32> to vector<16x128xf32>
    %cst = arith.constant 1.000000e+01 : f32
    %5 = vector.broadcast %cst : f32 to vector<16x128xf32>
    %6 = arith.mulf %4, %5 : vector<16x128xf32>
    %cst_3 = arith.constant dense<0xFF800000> : vector<16xf32>
    %7 = vector.multi_reduction <maximumf>, %6, %cst_3 [1] : vector<16x128xf32> to vector<16xf32>
    %8 = vector.shape_cast %7 : vector<16xf32> to vector<16x1xf32>
    %9 = vector.broadcast %8 : vector<16x1xf32> to vector<16x128xf32>
    %10 = arith.subf %6, %9 : vector<16x128xf32>
    %11 = math.exp %10 : vector<16x128xf32>
    %cst_4 = arith.constant dense<0.000000e+00> : vector<16xf32>
    %12 = vector.multi_reduction <add>, %11, %cst_4 [1] : vector<16x128xf32> to vector<16xf32>
    %13 = vector.shape_cast %12 : vector<16xf32> to vector<16x1xf32>
    %14 = math.log %13 : vector<16x1xf32>
    %15 = vector.broadcast %14 : vector<16x1xf32> to vector<16x128xf32>
    %16 = arith.subf %15, %10 : vector<16x128xf32>
    %c2_i32 = arith.constant 2 : i32
    %17 = arith.cmpi slt, %arg1, %c2_i32 : i32
    %c1_i32 = arith.constant 1 : i32
    %18 = arith.subi %c1_i32, %arg1 : i32
    %c2_i32_5 = arith.constant 2 : i32
    %19 = arith.select %17, %18, %c2_i32_5 : i32
    %20 = arith.index_cast %19 : i32 to index
    %c0_6 = arith.constant 0 : index
    %c0_7 = arith.constant 0 : index
    %21 = vector.load %arg7[%20, %c0_6, %c0_7] : memref<3x16x128xf32, #tpu.memory_space<vmem>>, vector<1x16x128xf32>
    %22 = vector.shape_cast %21 : vector<1x16x128xf32> to vector<16x128xf32>
    %c0_8 = arith.constant 0 : index
    %c0_9 = arith.constant 0 : index
    %23 = vector.load %arg5[%c0_8, %c0_9] : memref<1x128xf32, #tpu.memory_space<vmem>>, vector<1x128xf32>
    %24 = arith.mulf %22, %16 : vector<16x128xf32>
    %cst_10 = arith.constant dense<0.000000e+00> : vector<128xf32>
    %25 = vector.multi_reduction <add>, %24, %cst_10 [0] : vector<16x128xf32> to vector<128xf32>
    %26 = vector.shape_cast %25 : vector<128xf32> to vector<1x128xf32>
    %27 = arith.addf %23, %26 : vector<1x128xf32>
    %c0_11 = arith.constant 0 : index
    %c0_12 = arith.constant 0 : index
    %28 = vector.load %arg5[%c0_11, %c0_12] : memref<1x128xf32, #tpu.memory_space<vmem>>, vector<1x128xf32>
    tpu.vector_store %arg5[%c0_11, %c0_12], %27 {strides = array<i32>} : memref<1x128xf32, #tpu.memory_space<vmem>>, vector<1x128xf32>,
    return
  }
  func.func @transform_0(%arg0: i32, %arg1: i32) -> (i32, i32, i32) {
    %c0_i32 = arith.constant 0 : i32
    %c0_i32_0 = arith.constant 0 : i32
    %c0_i32_1 = arith.constant 0 : i32
    return %c0_i32, %arg0, %c0_i32_0 : i32, i32, i32
  }
  func.func @transform_1(%arg0: i32, %arg1: i32) -> (i32, i32, i32) {
    %c0_i32 = arith.constant 0 : i32
    %c0_i32_0 = arith.constant 0 : i32
    return %arg1, %arg0, %c0_i32 : i32, i32, i32
  }
  func.func @transform_2(%arg0: i32, %arg1: i32) -> (i32, i32) {
    %c0_i32 = arith.constant 0 : i32
    %c0_i32_0 = arith.constant 0 : i32
    %c0_i32_1 = arith.constant 0 : i32
    return %c0_i32, %c0_i32_0 : i32, i32
  }
  func.func @transform_3(%arg0: i32, %arg1: i32) -> (i32, i32) {
    %c0_i32 = arith.constant 0 : i32
    %c0_i32_0 = arith.constant 0 : i32
    return %arg0, %c0_i32 : i32, i32
  }
  func.func @transform_4(%arg0: i32, %arg1: i32) -> (i32, i32) {
    %c0_i32 = arith.constant 0 : i32
    %c0_i32_0 = arith.constant 0 : i32
    return %arg0, %c0_i32 : i32, i32
  }
}

</mosaic_0001>

<bundles_post_ra>
// kernel: tpu_custom_call.1
= control target key start
LH: loop header
LB: loop body
LE: loop exit
PB: predicated region body
PF: predicated region fallthrough
CT: control target
= control target key end

     0   :  { %10 = vsyncpa [#allocation4], 0  ;;  %s1053_s0 = inlined_call_operand.hbm [shape: f32[2,16,128], index: 0, kind: input, shape index: {}]   ;;  %s1054_s1 = inlined_call_operand.hbm [shape: f32[4,16,128], index: 1, kind: input, shape index: {}]   ;;  %s1055_s2 = inlined_call_operand.vmem [shape: f32[1,128], index: 2, kind: input, shape index: {}]   ;;  %s1056_s3 = inlined_call_operand.hbm [shape: f32[1,128], index: 3, kind: output, shape index: {0}]   ;;  %s1057_s4 = inlined_call_operand.hbm [shape: f32[1,128], index: 4, kind: output, shape index: {1}]  }
   0x1   :  { %11 = vsyncpa [#allocation7], 0 }
   0x2   :  { %13 = vsyncpa [#allocation7 + $0x1], 0 }
   0x3   :  { %14 = vsyncpa [#allocation5], 0 }
   0x4   :  { %15 = vsyncpa [#allocation10], 0  ;;  %s829_s15 = smov 0   ;;  %s831_s16 = smov 0  }
   0x5   :  { %s833_s17 = smov 0   ;;  %s835_s18 = smov 0  }
   0x6   :  { %s837_s19 = smov 0   ;;  %s839_s20 = smov 0  }
   0x7 LB: > { %s496_s21 = sadd.s32 4294967295, %s795_s20   ;;  %p81_p0 = scmp.ne.s32.totalorder %s779_s16, %s775_s15  ;;  %s795_s20 = sphi %s839_s20, %s21_s20   ;;  %s791_s19 = sphi %s837_s19, %s1075_s19   ;;  %s787_s18 = sphi %s835_s18, %s1074_s18   ;;  %s783_s17 = sphi %s833_s17, %s1073_s17   ;;  %s779_s16 = sphi %s831_s16, %s1072_s16   ;;  %s775_s15 = sphi %s829_s15, %s1071_s15  }
   0x8   : > { %p861_p1 = scmp.eq.s32.totalorder %s496_s21, 0  ;;  %p497_p2 = scmp.ge.s32.totalorder %s795_s20, 1 }
   0x9   : > { %p165_p3 = scmp.lt.s32.totalorder %s795_s20, 5  ;;  %s797_s25 = smov [#allocation3]  }
   0xa   : > { %s1062_s22 = scalar_select %p861_p1, 1, 0 }
   0xb   : > { %p869_p4 = por %p861_p1, %p81_p0  ;;  %p873_p5 = pnand %p497_p2, %p165_p3 }
   0xc   : > { %s180_s26 = sshll.u32 %s797_s25, 4  ;;  %s30_s28 = sadd.s32 1, %s791_s19  ;;  %s181_s26 = int_to_ptr.vmem [resolvable:$true] %s180_s26 }
   0xd   : > { %s1063_s23 = scalar_select %p869_p4, 1, 0 }
   0xe   : > { %s1064_s24 = scalar_select %p873_p5, 1, 0 }
   0xf   : > { %p530_p6 = pneg %p873_p5  ;;  %s623_s5 = scalar_lea.hbm %s1053_s0, 512 }
  0x10   : > { %p624_p8 = scmp.ne.s32.totalorder %s1053_s0, %s623_s5  ;;  %p630_p12 = scmp.lt.u32.totalorder %s623_s5, %s1053_s0 }
  0x11   : > { %p881_p7 = pnand %p530_p6, %p861_p1 }
  0x13   : > { %p625_p9 = pneg %p881_p7 }
  0x15   : > { %p626_p10 = pnand %p625_p9, %p624_p8 }
  0x17   : > { %p627_p11 = pneg %p626_p10 }
  0x19   : > { %p632_p13 = pnand %p630_p12, %p627_p11 }
  0x1b   : > { %635 = shalt.err (!%p632_p13)
}
  0x1c   : > { %s636_s10 = scalar_lea.vmem %s181_s26, 512  ;;  %p644_p6 = scmp.lt.s32.totalorder %s181_s26, %s181_s26 }
  0x1d   : > { %p637_p0 = scmp.ne.s32.totalorder %s181_s26, %s636_s10  ;;  %p645_p4 = scmp.lt.s32.totalorder %s636_s10, %s636_s10 }
  0x1f   : > { %p639_p2 = pnand %p637_p0, %p625_p9  ;;  %p646_p1 = por %p645_p4, %p644_p6 }
  0x21   : > { %p640_p3 = pneg %p639_p2 }
  0x23   : > { %p647_p5 = pnand %p646_p1, %p640_p3 }
  0x25   : > { %650 = shalt.err (!%p647_p5)
}
  0x26   : > { %s798_s11 = smov 128   ;;  %s799_s12 = smov 8  }
  0x27   : > { %533 = dma.hbm_to_vmem [thread:$0]  (!%p881_p7), %s1053_s0, 512, %s181_s26, [#allocation4], %s798_s11, %s798_s11, %s799_s12  }
  0x28   : > { %p31_p1 = scmp.ge.s32.totalorder %s30_s28, 4  ;;  %s68_s15 = sadd.s32 1, %s783_s17 }
  0x29   : > { %p75_p4 = scmp.ne.s32.totalorder %s783_s17, %s779_s16  ;;  %p76_p5 = scmp.eq.s32.totalorder %s795_s20, 0 }
  0x2a   : > { %s1077_s28 = smov (%p31_p1, %s30_s28), 0  ;;  %p539_p9 = scmp.lt.s32.totalorder %s795_s20, 4 }
  0x2b   : > { %p77_p8 = por %p76_p5, %p75_p4  ;;  %s63_s25 = ssub.s32 %s791_s19, %s1077_s28 }
  0x2c   : > { %s197_s29 = sand.u32 1, %s783_s17   ;;  %p66_p10 = scmp.eq.s32.totalorder %s63_s25, 0 }
  0x2d   : > { %s500_s27 = sshll.u32 %s197_s29, 4  ;;  %s515_s30 = sshll.u32 %s791_s19, 8 }
  0x2e   : > { %s917_s5 = scalar_select %p66_p10, %s783_s17, %s68_s15  }
  0x2f   : > { %s922_s26 = scalar_lea.hbm %s1054_s1, %s515_s30  ;;  %s201_s8 = scalar_lea.vmem [#allocation6], %s500_s27 }
  0x30   : > { %s210_s9 = sshll.u32 %s201_s8, 4  ;;  %p924_p7 = pnand %p539_p9, %p77_p8  ;;  %s928_s9 = int_to_ptr.vmem [resolvable:$true] %s210_s9 }
  0x31   : > { %s930_s13 = scalar_lea.sflag [#allocation7], %s197_s29  ;;  %s651_s14 = scalar_lea.hbm %s922_s26, 256 }
  0x32   : > { %p652_p11 = scmp.ne.s32.totalorder %s922_s26, %s651_s14  ;;  %p653_p12 = pneg %p924_p7 }
  0x33   : > { %s656_s27 = scalar_lea.hbm %s1054_s1, 1024  ;;  %p657_p2 = scmp.lt.u32.totalorder %s922_s26, %s1054_s1 }
  0x34   : > { %p654_p13 = pnand %p653_p12, %p652_p11  ;;  %p658_p3 = scmp.lt.u32.totalorder %s656_s27, %s651_s14 }
  0x35   : > { %p660_p1 = scmp.lt.u32.totalorder %s651_s14, %s922_s26 }
  0x36   : > { %p655_p0 = pneg %p654_p13  ;;  %p659_p6 = por %p658_p3, %p657_p2 }
  0x38   : > { %p661_p4 = por %p660_p1, %p659_p6 }
  0x3a   : > { %p662_p5 = pnand %p661_p4, %p655_p0 }
  0x3c   : > { %665 = shalt.err (!%p662_p5)
}
  0x3d   : > { %s666_s29 = scalar_lea.vmem %s928_s9, 256  ;;  %s800_s7 = smov [#allocation6]  }
  0x3e   : > { %p667_p8 = scmp.ne.s32.totalorder %s928_s9, %s666_s29  ;;  %s671_s8 = sshll.u32 %s800_s7, 4  ;;  %s672_s8 = int_to_ptr.vmem [resolvable:$false] %s671_s8 }
  0x3f   : > { %s673_s15 = scalar_lea.vmem %s672_s8, 512  ;;  %p674_p11 = scmp.lt.s32.totalorder %s928_s9, %s672_s8 }
  0x40   : > { %p669_p9 = pnand %p667_p8, %p653_p12  ;;  %p675_p13 = scmp.lt.s32.totalorder %s673_s15, %s666_s29 }
  0x42   : > { %p670_p10 = pneg %p669_p9  ;;  %p676_p2 = por %p675_p13, %p674_p11 }
  0x44   : > { %p677_p3 = pnand %p676_p2, %p670_p10 }
  0x46   : > { %680 = shalt.err (!%p677_p3)
}
  0x47   : > { %537 = dma.hbm_to_vmem [thread:$0]  (!%p924_p7), %s922_s26, 256, %s928_s9, %s930_s13, %s798_s11, %s798_s11, %s799_s12  }
  0x48   : > { %p1067_p12 = scmp.ne.s32.totalorder %s1064_s24, 0 }
  0x49   : > { %p1068_p0 = scmp.ne.s32.totalorder (!%p1067_p12), %s1062_s22, 0 }
  0x4a   : > { %222 = sbr.rel (%p1067_p12) target bundleno = 771 (0x303), region = 32 }
  0x51   : > { %758 = dma.done.wait (%p1068_p0), [#allocation4], 512  }
  0x52   : > { %760 = vsyncadd (%p1068_p0), [#allocation4], 4294966784  ;;  %s228_s14 = sand.u32 1, %s779_s16   ;;  %p1069_p6 = scmp.ne.s32.totalorder %s1063_s23, 0 }
  0x53   : > { %s968_s10 = sshll.u32 %s228_s14, 4  ;;  %s229_s25 = scalar_lea.sflag [#allocation7], %s228_s14 }
  0x54   : > { %s232_s27 = scalar_lea.vmem [#allocation6], %s968_s10 }
  0x55   : > { %762 = dma.done.wait (%p1069_p6), %s229_s25, 256  }
  0x56   : > { %764 = vsyncadd (%p1069_p6), %s229_s25, 4294967040  ;;  %p506_p7 = scmp.ne.s32.totalorder %s787_s18, 0 }
  0x57   : > { %v258_v0 = vld [vmem:[#allocation3] sm:$0xff] (!%p506_p7)  ;;  %v507_v1 = vld [vmem:[%s1055_s2] ss:$0 sm:$0xff] (!%p506_p7)  ;;  %v259_v6 = vld [vmem:[#allocation3 + $0x8] sm:$0xff] (!%p506_p7)  ;;  %v801_v38 = vmov (!%p506_p7), 0.0  }
  0x58   : > { %257 = sbr.rel (%p506_p7) target bundleno = 415 (0x19f), region = 44  ;;  %v260_v2 = vld [vmem:[#allocation3 + $0x10] sm:$0xff] (!%p506_p7)  ;;  %v279_v3 = vsub.f32 (!%p506_p7), %v258_v0, %v507_v1  ;;  %v261_v7 = vld [vmem:[#allocation3 + $0x18] sm:$0xff] (!%p506_p7)  ;;  %v280_v8 = vsub.f32 (!%p506_p7), %v259_v6, %v507_v1  ;;  %337 = vst [vmem:[#allocation8] sm:$0x1] (!%p506_p7), %v801_v38 }
  0x59   : > { %v281_v4 = vsub.f32 (!%p506_p7), %v260_v2, %v507_v1  ;;  %v263_v5 = vadd.f32 (!%p506_p7), %v260_v2, %v258_v0  ;;  %v282_v9 = vsub.f32 (!%p506_p7), %v261_v7, %v507_v1  ;;  %v264_v10 = vadd.f32 (!%p506_p7), %v261_v7, %v259_v6 }
  0x5a   : > { %v283_v11 = vmul.f32 (!%p506_p7), 16.0, %v279_v3  ;;  %v284_v14 = vmul.f32 (!%p506_p7), 16.0, %v280_v8 }
  0x5b   : > { %v285_v12 = vmul.f32 (!%p506_p7), 16.0, %v281_v4  ;;  %v265_v13 = vadd.f32 (!%p506_p7), %v264_v10, %v263_v5  ;;  %v286_v15 = vmul.f32 (!%p506_p7), 16.0, %v282_v9 }
  0x5c   : > { %287 = vmax.xlane.f32.xlu0 (!%p506_p7), %v283_v11 }
  0x5d   : > { %291 = vmax.xlane.f32.xlu1 (!%p506_p7), %v285_v12  ;;  %v266_v16 = vrot.slane (!%p506_p7), %v265_v13, 4 }
  0x5f   : > { %v267_v17 = vadd.f32 %v266_v16, %v265_v13 }
  0x60   : > { %289 = vmax.xlane.f32.xlu0 %v284_v14 }
  0x61   : > { %293 = vmax.xlane.f32.xlu1 %v286_v15  ;;  %v268_v18 = vrot.slane %v267_v17, 2 }
  0x63   : > { %v269_v19 = vadd.f32 %v268_v18, %v267_v17 }
  0x65   : > { %v270_v20 = vrot.slane %v269_v19, 1 }
  0x67   : > { %v271_v21 = vadd.f32 %v270_v20, %v269_v19 }
  0x69   : > { %272 = vst [vmem:[#allocation9] sm:$0x1] %v271_v21 }
  0xe9   : > { %v288_v22 = vpop.xlane.xlu0 %287 }
  0xea   : > { %v292_v23 = vpop.xlane.xlu1 %291  ;;  %v295_v24 = vsub.f32 %v283_v11, %v288_v22 }
  0xeb   : > { %v297_v25 = vsub.f32 %v285_v12, %v292_v23 }
  0xec   : > { %v299_v26 = vmul.f32 1.442695, %v295_v24 }
  0xed   : > { %v303_v27 = vmul.f32 1.442695, %v297_v25  ;;  %v290_v28 = vpop.xlane.xlu0 %289 }
  0xee   : > { %v294_v29 = vpop.xlane.xlu1 %293  ;;  %599 = vpow2.f32 %v299_v26  ;;  %v296_v30 = vsub.f32 %v284_v14, %v290_v28 }
  0xef   : > { %v298_v31 = vsub.f32 %v286_v15, %v294_v29  ;;  %601 = vpow2.f32 %v303_v27 }
  0xf0   : > { %v301_v32 = vmul.f32 1.442695, %v296_v30 }
  0xf1   : > { %v305_v33 = vmul.f32 1.442695, %v298_v31 }
  0xf2   : > { %603 = vpow2.f32 %v301_v32 }
  0xf3   : > { %605 = vpow2.f32 %v305_v33 }
  0xf8   : > { %v600_v34 = vpop.eup %599 }
  0xf9   : > { %307 = vadd.xlane.f32.xlu0 %v600_v34  ;;  %v602_v35 = vpop.eup %601 }
  0xfc   : > { %v604_v36 = vpop.eup %603 }
  0xfd   : > { %311 = vadd.xlane.f32.xlu0 %v602_v35  ;;  %309 = vadd.xlane.f32.xlu1 %v604_v36  ;;  %v606_v37 = vpop.eup %605 }
 0x101   : > { %313 = vadd.xlane.f32.xlu1 %v606_v37 }
 0x186   : > { %v308_v39 = vpop.xlane.xlu0 %307 }
 0x187   : > { %607 = vrcp.f32 %v308_v39 }
 0x18a   : > { %v310_v40 = vpop.xlane.xlu1 %309  ;;  %v312_v41 = vpop.xlane.xlu0 %311 }
 0x18b   : > { %609 = vrcp.f32 %v310_v40 }
 0x18c   : > { %611 = vrcp.f32 %v312_v41 }
 0x18e   : > { %v314_v42 = vpop.xlane.xlu1 %313 }
 0x18f   : > { %613 = vrcp.f32 %v314_v42 }
 0x191   : > { %v608_v43 = vpop.eup %607 }
 0x192   : > { %v323_v44 = vmul.f32 %v608_v43, %v600_v34 }
 0x194   : > { %327 = vst [vmem:[#allocation2] sm:$0xff] %v323_v44 }
 0x195   : > { %v610_v45 = vpop.eup %609 }
 0x196   : > { %v612_v46 = vpop.eup %611  ;;  %v324_v47 = vmul.f32 %v610_v45, %v604_v36 }
 0x197   : > { %v325_v48 = vmul.f32 %v612_v46, %v602_v35 }
 0x198   : > { %328 = vst [vmem:[#allocation2 + $0x8] sm:$0xff] %v324_v47 }
 0x199   : > { %v614_v49 = vpop.eup %613  ;;  %330 = vst [vmem:[#allocation2 + $0x10] sm:$0xff] %v325_v48  ;;  %v332_v50 = vadd.f32 %v325_v48, %v323_v44 }
 0x19a   : > { %v326_v51 = vmul.f32 %v614_v49, %v606_v37 }
 0x19b   : > { %335 = vst [vmem:[#allocation2 + $0x20] sm:$0xff] %v332_v50 }
 0x19c   : > { %331 = vst [vmem:[#allocation2 + $0x18] sm:$0xff] %v326_v51  ;;  %v333_v52 = vadd.f32 %v326_v51, %v324_v47 }
 0x19e   : > { %336 = vst [vmem:[#allocation2 + $0x28] sm:$0xff] %v333_v52 }
 0x19f PF: > { %v338_v53 = vld [vmem:[%s232_s27] sm:$0xff]  ;;  %v339_v54 = vld [vmem:[%s232_s27 + $0x8] sm:$0xff]  ;;  %p985_p1 = scmp.eq.s32.totalorder %s496_s21, 3  ;;  %s802_s11 = smov [#allocation9]  }
 0x1a0   : > { %v340_v55 = vmul.f32 10.0, %v338_v53  ;;  %v341_v56 = vmul.f32 10.0, %v339_v54  ;;  %s403_s12 = sshll.u32 %s802_s11, 4  ;;  %s404_s12 = int_to_ptr.vmem [resolvable:$true] %s403_s12 }
 0x1a1   : > { %s681_s26 = scalar_lea.vmem %s404_s12, 16  ;;  %s687_s9 = scalar_lea.vmem %s404_s12, 32 }
 0x1a2   : > { %342 = vmax.xlane.f32.xlu0 %v340_v55  ;;  %p682_p4 = scmp.ne.s32.totalorder %s404_s12, %s681_s26  ;;  %p688_p9 = scmp.lt.s32.totalorder %s404_s12, %s404_s12 }
 0x1a3   : > { %p689_p10 = scmp.lt.s32.totalorder %s687_s9, %s681_s26 }
 0x1a4   : > { %p683_p5 = pnand %p682_p4, %p985_p1 }
 0x1a5   : > { %p690_p11 = por %p689_p10, %p688_p9 }
 0x1a6   : > { %344 = vmax.xlane.f32.xlu0 %v341_v56  ;;  %p684_p8 = pneg %p683_p5 }
 0x1a8   : > { %p691_p13 = pnand %p690_p11, %p684_p8 }
 0x22f   : > { %v343_v57 = vpop.xlane.xlu0 %342 }
 0x230   : > { %v346_v58 = vsub.f32 %v340_v55, %v343_v57 }
 0x232   : > { %v348_v59 = vmul.f32 1.442695, %v346_v58 }
 0x233   : > { %v345_v60 = vpop.xlane.xlu0 %344 }
 0x234   : > { %v347_v61 = vsub.f32 %v341_v56, %v345_v60  ;;  %615 = vpow2.f32 %v348_v59 }
 0x236   : > { %v350_v62 = vmul.f32 1.442695, %v347_v61 }
 0x238   : > { %617 = vpow2.f32 %v350_v62 }
 0x23e   : > { %v616_v63 = vpop.eup %615 }
 0x23f   : > { %352 = vadd.xlane.f32.xlu1 %v616_v63 }
 0x242   : > { %v618_v0 = vpop.eup %617 }
 0x243   : > { %354 = vadd.xlane.f32.xlu1 %v618_v0 }
 0x244   : > { %694 = shalt.err (!%p691_p13)
}
 0x245   : > { %s695_s30 = scalar_lea.hbm %s1057_s4, 16 }
 0x246   : > { %p696_p2 = scmp.ne.s32.totalorder %s1057_s4, %s695_s30  ;;  %p701_p0 = scmp.lt.u32.totalorder %s695_s30, %s1057_s4 }
 0x248   : > { %p697_p3 = pnand %p696_p2, %p985_p1 }
 0x24a   : > { %p698_p12 = pneg %p697_p3 }
 0x24c   : > { %p703_p6 = pnand %p701_p0, %p698_p12 }
 0x24e   : > { %706 = shalt.err (!%p703_p6)
}
 0x24f   : > { %525 = dma.vmem_to_hbm [thread:$0]  (%p985_p1), %s404_s12, 16, %s1057_s4, [#allocation10]   ;;  %v369_v19 = vld [vmem:[#allocation8] sm:$0x1] }
 0x250   : > { %p362_p7 = scmp.lt.s32.totalorder %s787_s18, 2  ;;  %s363_s10 = ssub.s32 1, %s787_s18 }
 0x251   : > { %s803_s18 = smov [#allocation8]  }
 0x252   : > { %s1079_s10 = smov (!%p362_p7, %s363_s10), 2  ;;  %s390_s24 = sshll.u32 %s803_s18, 4  ;;  %s391_s24 = int_to_ptr.vmem [resolvable:$true] %s390_s24 }
 0x253   : > { %s508_s25 = sshll.u32 %s1079_s10, 4  ;;  %s707_s22 = scalar_lea.vmem %s391_s24, 16 }
 0x254   : > { %s366_s27 = scalar_lea.vmem [#allocation2], %s508_s25  ;;  %p708_p4 = scmp.ne.s32.totalorder %s391_s24, %s707_s22 }
 0x255   : > { %v367_v8 = vld [vmem:[%s366_s27] sm:$0xff]  ;;  %v368_v9 = vld [vmem:[%s366_s27 + $0x8] sm:$0xff]  ;;  %s713_s11 = scalar_lea.vmem %s391_s24, 32  ;;  %p714_p9 = scmp.lt.s32.totalorder %s391_s24, %s391_s24 }
 0x256   : > { %p709_p5 = pnand %p708_p4, %p985_p1  ;;  %p715_p10 = scmp.lt.s32.totalorder %s713_s11, %s707_s22 }
 0x258   : > { %p710_p8 = pneg %p709_p5  ;;  %p716_p11 = por %p715_p10, %p714_p9 }
 0x25a   : > { %p717_p13 = pnand %p716_p11, %p710_p8 }
 0x2cc   : > { %v353_v1 = vpop.xlane.xlu1 %352 }
 0x2cd   : > { %619 = vlog2.f32 %v353_v1 }
 0x2d0   : > { %v355_v2 = vpop.xlane.xlu1 %354 }
 0x2d1   : > { %621 = vlog2.f32 %v355_v2 }
 0x2d7   : > { %v620_v3 = vpop.eup %619 }
 0x2d8   : > { %v357_v4 = vmul.f32 0.6931472, %v620_v3 }
 0x2da   : > { %v360_v6 = vsub.f32 %v357_v4, %v346_v58 }
 0x2db   : > { %v622_v5 = vpop.eup %621 }
 0x2dc   : > { %v359_v7 = vmul.f32 0.6931472, %v622_v5  ;;  %v370_v11 = vmul.f32 %v367_v8, %v360_v6 }
 0x2de   : > { %v361_v10 = vsub.f32 %v359_v7, %v347_v61 }
 0x2e0   : > { %v371_v12 = vmul.f32 %v368_v9, %v361_v10 }
 0x2e2   : > { %v372_v13 = vadd.f32 %v371_v12, %v370_v11 }
 0x2e4   : > { %v373_v14 = vrot.slane %v372_v13, 4 }
 0x2e6   : > { %v374_v15 = vadd.f32 %v373_v14, %v372_v13 }
 0x2e8   : > { %v375_v16 = vrot.slane %v374_v15, 2 }
 0x2ea   : > { %v376_v17 = vadd.f32 %v375_v16, %v374_v15 }
 0x2ec   : > { %v377_v18 = vrot.slane %v376_v17, 1 }
 0x2ee   : > { %v378_v20 = vadd.f32 %v377_v18, %v376_v17 }
 0x2f0   : > { %v379_v21 = vadd.f32 %v378_v20, %v369_v19 }
 0x2f2   : > { %380 = vst [vmem:[#allocation8] sm:$0x1] %v379_v21 }
 0x2f3   : > { %720 = shalt.err (!%p717_p13)
}
 0x2f4   : > { %s721_s9 = scalar_lea.hbm %s1056_s3, 16 }
 0x2f5   : > { %p722_p2 = scmp.ne.s32.totalorder %s1056_s3, %s721_s9  ;;  %p727_p0 = scmp.lt.u32.totalorder %s721_s9, %s1056_s3 }
 0x2f7   : > { %p723_p3 = pnand %p722_p2, %p985_p1 }
 0x2f9   : > { %p724_p12 = pneg %p723_p3 }
 0x2fb   : > { %p729_p6 = pnand %p727_p0, %p724_p12 }
 0x2fd   : > { %732 = shalt.err (!%p729_p6)
}
 0x2fe   : > { %523 = dma.vmem_to_hbm [thread:$0]  (%p985_p1), %s391_s24, 16, %s1056_s3, [#allocation5]  }
 0x2ff   : > { %766 = dma.done.wait (%p985_p1), [#allocation5], 16  }
 0x300   : > { %768 = vsyncadd (%p985_p1), [#allocation5], 4294967280 }
 0x301   : > { %770 = dma.done.wait (%p985_p1), [#allocation10], 16  }
 0x302   : > { %772 = vsyncadd (%p985_p1), [#allocation10], 4294967280 }
 0x303 PF: > { %s21_s20 = sadd.s32 1, %s795_s20   ;;  %s1071_s15 = smov %s779_s16 }
 0x304   : > { %p18_p7 = scmp.ge.s32.totalorder %s21_s20, 6   ;;  %s1072_s16 = smov %s783_s17 }
 0x305   : > { %s1073_s17 = smov %s917_s5  ;;  %s1074_s18 = smov %s791_s19 }
 0x306   : > { %s1075_s19 = smov %s1077_s28  ;;  %20 = sbr.rel (!%p18_p7) target bundleno = 7 (0x7), region = 92 }
 0x30d   :  { %420 = vsyncpa [#allocation4], 1 }
 0x30e   :  { %422 = vsyncpa [#allocation4 + $0x1], 1 }
 0x30f   :  { %423 = vsyncpa [#allocation7], 1 }
 0x310   :  { %425 = vsyncpa [#allocation7 + $0x1], 1 }
 0x311   :  { %426 = vsyncpa [#allocation5], 1 }
 0x312   :  { %428 = vsyncpa [#allocation5 + $0x1], 1 }
 0x313   :  { %429 = vsyncpa [#allocation10], 1 }

</bundles_post_ra>
